<compile_context>
chip_gen: v5e
topology: v5e:2x2
jax: 0.10.0
libtpu: 0.0.40
codegen_flags: <defaults>
</compile_context>

<pallas_src>
import functools
import math

import jax
import jax.numpy as jnp
from jax.experimental import pallas as pl
from jax.experimental.pallas import tpu as pltpu

IGNORE_INDEX = -1.0           # deterministic "parameter" of the wrapper (ignore_index)
LANES = 128
SUBLANES = 8
SINGLE_BLOCK_MAX_ROWS = 2048  # <= 1 MiB per f32 input: one block, one grid step
# Biggest-first row-tile candidates for the streaming path. 4096 rows x 128 lanes of
# f32 = 2 MiB per input per step -> 8 MiB double-buffered for both inputs; well under
# the 32 MiB scoped-VMEM limit we request, and large enough that the ~0.35us per-step
# grid overhead is amortized (<5% of the HBM time per step on v6e).
TILE_ROWS_CANDIDATES = (4096, 2048, 1024, 512, 256, 128, 64, 32, 16, 8)


def _single_block_kernel(inp_ref, tgt_ref, out_ref, *, ignore_index, total_elems):
    # Whole problem in one block: no scratch, no accumulator chain, one reduce.
    inp = inp_ref[...].astype(jnp.float32)
    tgt = tgt_ref[...].astype(jnp.float32)
    mask = (tgt != ignore_index).astype(jnp.float32)
    diff = (inp - tgt) * mask
    out_ref[0, 0] = jnp.sum(diff * diff) / jnp.float32(total_elems)


def _tiled_kernel(inp_ref, tgt_ref, out_ref, acc_ref, *, ignore_index, total_elems):
    i = pl.program_id(0)

    @pl.when(i == 0)
    def _():
        acc_ref[...] = jnp.zeros_like(acc_ref)

    tile_r = inp_ref.shape[0]
    inp = inp_ref[...].astype(jnp.float32)
    tgt = tgt_ref[...].astype(jnp.float32)
    mask = (tgt != ignore_index).astype(jnp.float32)
    diff = (inp - tgt) * mask
    d2 = diff * diff
    # Fold the tile down to one vreg-shaped (8, 128) partial sum. The reshape keeps
    # (sublane, lane) tiles intact (no layout shuffle) and the axis-0 sum is just
    # tile_r/8 vreg adds on the VPU — all hidden under the next tile's DMA. The
    # expensive cross-lane XLU reduce happens exactly once, at the end.
    acc_ref[...] += jnp.sum(d2.reshape(tile_r // SUBLANES, SUBLANES, LANES), axis=0)

    @pl.when(i == pl.num_programs(0) - 1)
    def _():
        out_ref[0, 0] = jnp.sum(acc_ref[...]) / jnp.float32(total_elems)


def masked_mse_loss(inp, tgt, ignore_index=IGNORE_INDEX):
    """Pallas implementation of _MaskingLossWrapper(MSELoss(), ignore_index)."""
    assert inp.shape == tgt.shape
    total = math.prod(inp.shape)

    flat_in = inp.reshape(-1)
    flat_tgt = tgt.reshape(-1)
    # Pad to a whole number of (8, 128) vregs. Padded target positions hold
    # ignore_index so their mask is 0 and they contribute nothing to the sum;
    # the mean still divides by the ORIGINAL element count.
    pad = (-total) % (SUBLANES * LANES)
    if pad:
        flat_in = jnp.concatenate([flat_in, jnp.zeros((pad,), flat_in.dtype)])
        flat_tgt = jnp.concatenate(
            [flat_tgt, jnp.full((pad,), ignore_index, flat_tgt.dtype)])
    rows = (total + pad) // LANES
    # Native dtype (no wrapper-side upcast): the f32 cast happens in-registers.
    inp2 = flat_in.reshape(rows, LANES)
    tgt2 = flat_tgt.reshape(rows, LANES)

    if rows <= SINGLE_BLOCK_MAX_ROWS:
        kernel = functools.partial(
            _single_block_kernel, ignore_index=ignore_index, total_elems=total)
        out = pl.pallas_call(
            kernel,
            out_shape=jax.ShapeDtypeStruct((1, 1), jnp.float32),
            grid_spec=pltpu.PrefetchScalarGridSpec(
                num_scalar_prefetch=0,
                grid=(1,),
                in_specs=[
                    pl.BlockSpec((rows, LANES), lambda i: (0, 0)),
                    pl.BlockSpec((rows, LANES), lambda i: (0, 0)),
                ],
                out_specs=pl.BlockSpec(memory_space=pltpu.SMEM),
            ),
            compiler_params=pltpu.CompilerParams(
                dimension_semantics=("arbitrary",)),
        )(inp2, tgt2)
        return out[0, 0]

    # Large-input path: biggest row tile that divides rows (rows is a multiple of 8
    # thanks to the padding above), single-vreg accumulator, single final reduce.
    tile_r = rows
    for cand in TILE_ROWS_CANDIDATES:
        if rows % cand == 0:
            tile_r = cand
            break
    # TODO(synk): on v7x, a leading 'parallel' grid axis with per-core partial sums
    # would engage both TensorCores; single-core is sufficient at demo sizes.
    kernel = functools.partial(
        _tiled_kernel, ignore_index=ignore_index, total_elems=total)
    out = pl.pallas_call(
        kernel,
        out_shape=jax.ShapeDtypeStruct((1, 1), jnp.float32),
        grid_spec=pltpu.PrefetchScalarGridSpec(
            num_scalar_prefetch=0,
            grid=(rows // tile_r,),
            in_specs=[
                pl.BlockSpec((tile_r, LANES), lambda i: (i, 0)),
                pl.BlockSpec((tile_r, LANES), lambda i: (i, 0)),
            ],
            out_specs=pl.BlockSpec(memory_space=pltpu.SMEM),
            scratch_shapes=[pltpu.VMEM((SUBLANES, LANES), jnp.float32)],
        ),
        compiler_params=pltpu.CompilerParams(
            dimension_semantics=("arbitrary",),
            vmem_limit_bytes=32 << 20,   # stays within v7x's smaller scoped VMEM
        ),
    )(inp2, tgt2)
    return out[0, 0]


if __name__ == "__main__":
    key = jax.random.PRNGKey(0)
    k_in, k_tgt, k_msk = jax.random.split(key, 3)

    B, C, H, W = 2, 4, 16, 16
    x = jax.random.normal(k_in, (B, C, H, W), dtype=jnp.float32)
    t = jax.random.normal(k_tgt, (B, C, H, W), dtype=jnp.float32)
    # sprinkle ignore_index into the target deterministically (~20% of entries)
    drop = jax.random.uniform(k_msk, (B, C, H, W)) < 0.2
    t = jnp.where(drop, jnp.float32(IGNORE_INDEX), t)

    loss = masked_mse_loss(x, t)
    loss = jax.block_until_ready(loss)

    # reference (pure JAX) check of the PyTorch wrapper semantics
    mask = (t != IGNORE_INDEX).astype(jnp.float32)
    ref = jnp.mean((x * mask - t * mask) ** 2)
    assert jnp.allclose(loss, ref, rtol=1e-5, atol=1e-6), (loss, ref)

    # exercise the tiled (large-input) path too, with a ragged tail that needs padding
    N = 3 * 4096 * 128 + 77
    xb = jax.random.normal(jax.random.PRNGKey(1), (N,), dtype=jnp.float32)
    tb = jax.random.normal(jax.random.PRNGKey(2), (N,), dtype=jnp.float32)
    tb = jnp.where(jax.random.uniform(jax.random.PRNGKey(3), (N,)) < 0.2,
                   jnp.float32(IGNORE_INDEX), tb)
    loss_b = jax.block_until_ready(masked_mse_loss(xb, tb))
    mb = (tb != IGNORE_INDEX).astype(jnp.float32)
    ref_b = jnp.mean((xb * mb - tb * mb) ** 2)
    assert jnp.allclose(loss_b, ref_b, rtol=1e-5, atol=1e-6), (loss_b, ref_b)

    print("KERNEL_OK")
</pallas_src>

<mosaic_0001>
module attributes {stable_mosaic.version = 11 : i64} {
  func.func @_single_block_kernel(%arg0: i32, %arg1: memref<16x128xf32, #tpu.memory_space<vmem>>, %arg2: memref<16x128xf32, #tpu.memory_space<vmem>>, %arg3: memref<1x1xf32, #tpu.memory_space<smem>>) attributes {dimension_semantics = [#tpu.dimension_semantics<arbitrary>], iteration_bounds = array<i64: 1>, scalar_prefetch = 0 : i64, scratch_operands = 0 : i64, tpu.core_type = #tpu.core_type<tc>, window_params = [{pipeline_mode = #tpu.pipeline_mode<synchronous>, transform_indices = @transform_0, window_bounds = array<i64: 16, 128>}, {pipeline_mode = #tpu.pipeline_mode<synchronous>, transform_indices = @transform_1, window_bounds = array<i64: 16, 128>}, {transform_indices = @transform_2, window_bounds = array<i64: 1, 1>}]} {
    %c0 = arith.constant 0 : index
    %c0_0 = arith.constant 0 : index
    %0 = vector.load %arg1[%c0, %c0_0] : memref<16x128xf32, #tpu.memory_space<vmem>>, vector<16x128xf32>
    %c0_1 = arith.constant 0 : index
    %c0_2 = arith.constant 0 : index
    %1 = vector.load %arg2[%c0_1, %c0_2] : memref<16x128xf32, #tpu.memory_space<vmem>>, vector<16x128xf32>
    %cst = arith.constant -1.000000e+00 : f32
    %2 = vector.broadcast %cst : f32 to vector<16x128xf32>
    %3 = arith.cmpf one, %1, %2 : vector<16x128xf32>
    %4 = arith.extui %3 : vector<16x128xi1> to vector<16x128xi32>
    %5 = arith.sitofp %4 : vector<16x128xi32> to vector<16x128xf32>
    %6 = arith.subf %0, %1 : vector<16x128xf32>
    %7 = arith.mulf %6, %5 : vector<16x128xf32>
    %8 = arith.mulf %7, %7 : vector<16x128xf32>
    %9 = vector.shape_cast %8 : vector<16x128xf32> to vector<1x16x128xf32>
    %cst_3 = arith.constant dense<0.000000e+00> : vector<1xf32>
    %10 = vector.multi_reduction <add>, %9, %cst_3 [1, 2] : vector<1x16x128xf32> to vector<1xf32>
    %11 = vector.shape_cast %10 : vector<1xf32> to vector<1x1x1xf32>
    %12 = vector.extract %11[0, 0, 0] : f32 from vector<1x1x1xf32>
    %cst_4 = arith.constant 2.048000e+03 : f32
    %13 = arith.divf %12, %cst_4 : f32
    %c0_5 = arith.constant 0 : index
    %c0_6 = arith.constant 0 : index
    %14 = memref.load %arg3[%c0_5, %c0_6] : memref<1x1xf32, #tpu.memory_space<smem>>
    memref.store %13, %arg3[%c0_5, %c0_6] : memref<1x1xf32, #tpu.memory_space<smem>>
    return
  }
  func.func @transform_0(%arg0: i32) -> (i32, i32) {
    %c0_i32 = arith.constant 0 : i32
    %c0_i32_0 = arith.constant 0 : i32
    %c0_i32_1 = arith.constant 0 : i32
    return %c0_i32, %c0_i32_0 : i32, i32
  }
  func.func @transform_1(%arg0: i32) -> (i32, i32) {
    %c0_i32 = arith.constant 0 : i32
    %c0_i32_0 = arith.constant 0 : i32
    %c0_i32_1 = arith.constant 0 : i32
    return %c0_i32, %c0_i32_0 : i32, i32
  }
  func.func @transform_2(%arg0: i32) -> (i32, i32) {
    %c0_i32 = arith.constant 0 : i32
    %c0_i32_0 = arith.constant 0 : i32
    %c0_i32_1 = arith.constant 0 : i32
    return %c0_i32, %c0_i32_0 : i32, i32
  }
}

</mosaic_0001>

<bundles_post_ra>
// kernel: tpu_custom_call.1
= control target key start
LH: loop header
LB: loop body
LE: loop exit
PB: predicated region body
PF: predicated region fallthrough
CT: control target
= control target key end

     0   :  { %7 = vsyncpa [#allocation3], 0  ;;  %s210_s0 = inlined_call_operand.hbm [shape: f32[16,128], index: 0, kind: input, shape index: {}]   ;;  %s211_s1 = inlined_call_operand.hbm [shape: f32[16,128], index: 1, kind: input, shape index: {}]   ;;  %s212_s2 = inlined_call_operand.hbm [shape: f32[1,1], index: 2, kind: output, shape index: {}]  }
   0x1   :  { %8 = vsyncpa [#allocation6], 0 }
   0x2   :  { %9 = vsyncpa [#allocation4], 0  ;;  %s14_s11 = sshll.u32 %s210_s0, 4  ;;  %s179_s12 = smov [#allocation2]   ;;  %s15_s11 = int_to_ptr.hbm [resolvable:$true] %s14_s11 }
   0x3   :  { %s16_s13 = sshll.u32 %s179_s12, 4  ;;  %s27_s16 = sshll.u32 %s211_s1, 4  ;;  %s17_s13 = int_to_ptr.vmem [resolvable:$true] %s16_s13  ;;  %s28_s16 = int_to_ptr.hbm [resolvable:$true] %s27_s16 }
   0x4   :  { %s180_s17 = smov 128   ;;  %s181_s18 = smov 8  }
   0x5   :  { %22 = dma.hbm_to_vmem [thread:$0]  %s15_s11, 256, %s17_s13, [#allocation3], %s180_s17, %s180_s17, %s181_s18  }
   0x6   :  { %s182_s19 = smov [#allocation5]  }
   0x7   :  { %s29_s20 = sshll.u32 %s182_s19, 4  ;;  %s30_s20 = int_to_ptr.vmem [resolvable:$true] %s29_s20 }
   0x8   :  { %35 = dma.hbm_to_vmem [thread:$0]  %s28_s16, 256, %s30_s20, [#allocation6], %s180_s17, %s180_s17, %s181_s18  }
   0x9   :  { %173 = dma.done.wait [#allocation3], 256  }
   0xa   :  { %174 = vsyncadd [#allocation3], 4294967040 }
   0xb   :  { %175 = dma.done.wait [#allocation6], 256  }
   0xc   :  { %176 = vsyncadd [#allocation6], 4294967040  ;;  %v44_v0 = vld [vmem:[#allocation2] sm:$0xff]  ;;  %v45_v1 = vld [vmem:[#allocation2 + $0x8] sm:$0xff]  ;;  %v183_v5 = vmov 0.0   ;;  %v184_v14 = vmov 2048.0  }
   0xd   :  { %v46_v2 = vld [vmem:[#allocation5] sm:$0xff]  ;;  %v47_v3 = vld [vmem:[#allocation5 + $0x8] sm:$0xff]  ;;  %111 = vrcp.f32 %v184_v14  ;;  %s86_s21 = sshll.u32 %s212_s2, 4  ;;  %s185_s25 = smov [#allocation7]   ;;  %s87_s21 = int_to_ptr.hbm [resolvable:$true] %s86_s21 }
   0xe   :  { %vm48_vm0 = vcmp.ne.f32.partialorder %v46_v2, -1.0  ;;  %v54_v4 = vsub.f32 %v44_v0, %v46_v2  ;;  %vm49_vm1 = vcmp.ne.f32.partialorder %v47_v3, -1.0  ;;  %v55_v7 = vsub.f32 %v45_v1, %v47_v3 }
   0xf   :  { %v98_v6 = vsel %vm48_vm0, 1.0, %v183_v5  ;;  %v99_v8 = vsel %vm49_vm1, 1.0, %v183_v5 }
  0x10   :  { %v56_v9 = vmul.f32 %v98_v6, %v54_v4  ;;  %v57_v10 = vmul.f32 %v99_v8, %v55_v7 }
  0x12   :  { %v58_v11 = vmul.f32 %v56_v9, %v56_v9  ;;  %v59_v12 = vmul.f32 %v57_v10, %v57_v10 }
  0x13   :  { %v112_v15 = vpop.eup %111 }
  0x14   :  { %v60_v13 = vadd.f32 %v59_v12, %v58_v11  ;;  %v71_v16 = vmul.f32 2048.0, %v112_v15  ;;  %vm75_vm2 = vweird.f32 %v112_v15 }
  0x16   :  { %61 = vadd.xlane.f32.xlu0 %v60_v13  ;;  %v72_v17 = vsub.f32 1.0, %v71_v16 }
  0x18   :  { %v73_v21 = vmul.f32 %v112_v15, %v72_v17 }
  0x1a   :  { %v74_v24 = vadd.f32 %v112_v15, %v73_v21 }
  0x1c   :  { %v76_v27 = vsel %vm75_vm2, %v112_v15, %v74_v24 }
  0x89   :  { %v62_v18 = vpop.xlane.xlu0 %61 }
  0x8a   :  { %v63_v19 = vrot.slane %v62_v18, 4 }
  0x8c   :  { %v64_v20 = vadd.f32 %v63_v19, %v62_v18 }
  0x8e   :  { %v65_v22 = vrot.slane %v64_v20, 2 }
  0x90   :  { %v66_v23 = vadd.f32 %v65_v22, %v64_v20 }
  0x92   :  { %v67_v25 = vrot.slane %v66_v23, 1 }
  0x94   :  { %v68_v26 = vadd.f32 %v67_v25, %v66_v23 }
  0x96   :  { %100 = vpush %v68_v26 }
  0x97   :  { %102 = vpush %v76_v27 }
  0xc7   :  { %s101_s22 = spop %100 }
  0xc8   :  { %s103_s23 = spop %102 }
  0xc9   :  { %s78_s24 = smul.f32 %s103_s23, %s101_s22 }
  0xcb   :  { %80 = sst [smem:[#allocation7]] %s78_s24 }
  0xcc   :  { %89 = dma.smem_to_hbm %s185_s25, 16, %s87_s21, [#allocation4]  }
  0xcd   :  { %177 = dma.done.wait [#allocation4], 16  }
  0xce   :  { %178 = vsyncadd [#allocation4], 4294967280 }
  0xcf   :  { %94 = sfence }
  0xd0   :  { %95 = vsyncpa [#allocation3], 1 }
  0xd1   :  { %96 = vsyncpa [#allocation6], 1 }
  0xd2   :  { %97 = vsyncpa [#allocation4], 1 }

</bundles_post_ra>
